<compile_context>
chip_gen: v7x
topology: tpu7x:2x2x1
jax: 0.10.0
libtpu: 0.0.40
codegen_flags: <defaults>
</compile_context>

<pallas_src>
import functools

import jax
import jax.numpy as jnp
from jax import lax
from jax.experimental import pallas as pl
from jax.experimental.pallas import tpu as pltpu

_LANE = 128        # lane width: batch tiles are multiples of this
_SUBLANE = 8       # f32 sublane tile: action rows padded to a multiple of this
_DEFAULT_TB = 1024 # default batch tile for large batches


def _round_up(n, m):
    return ((n + m - 1) // m) * m


def _default_compute_dtype():
    """bf16 on v6e/v7x (they have bf16 VPU/EUP); f32 on v5e and older."""
    try:
        kind = jax.devices()[0].device_kind.lower()
    except Exception:
        return jnp.float32
    if any(v in kind for v in ("v2", "v3", "v4", "v5")):
        return jnp.float32
    return jnp.bfloat16


def _dqn_kernel(x_ref, w1_ref, b1_ref, w2_ref, b2_ref, w3t_ref, b3t_ref, o_ref):
    cdt = x_ref.dtype  # compute dtype (f32 or bf16); biases & accum stay f32
    # layer1: (TB, S) @ (S, 64), bias-add in f32, tanh in compute dtype
    h1 = jnp.dot(x_ref[...], w1_ref[...], preferred_element_type=jnp.float32)
    h1 = jnp.tanh((h1 + b1_ref[...]).astype(cdt))
    # layer2: (TB, 64) @ (64, 64)
    h2 = jnp.dot(h1, w2_ref[...], preferred_element_type=jnp.float32)
    h2 = jnp.tanh((h2 + b2_ref[...]).astype(cdt))
    # out (transposed): (A_pad, 64) contracted with (TB, 64) over the 64 dim
    # -> (A_pad, TB).  Last dim is the batch tile (multiple of 128): unmasked vst.
    out_t = lax.dot_general(
        w3t_ref[...], h2,
        dimension_numbers=(((1,), (1,)), ((), ())),
        preferred_element_type=jnp.float32)
    o_ref[...] = (out_t + b3t_ref[...]).astype(o_ref.dtype)


@functools.partial(jax.jit, static_argnames=("block_batch", "compute_dtype"))
def dqn_forward(x, params, *, block_batch=None, compute_dtype=None):
    """Fused DQN forward: tanh(tanh(x@W1+b1)@W2+b2)@W3+b3.

    x: (batch, n_states) float32.
    params: (w1, b1, w2, b2, w3, b3) with weights stored as (in, out).
    """
    w1, b1, w2, b2, w3, b3 = params
    batch, n_states = x.shape
    hidden = w1.shape[1]
    n_actions = w3.shape[1]

    if compute_dtype is None:
        compute_dtype = _default_compute_dtype()

    # --- batch tiling -------------------------------------------------------
    if block_batch is not None:
        # guard: force lane-multiple tiles so BlockSpecs always satisfy (8,128)
        tb = _round_up(int(block_batch), _LANE)
    elif batch <= _LANE:
        tb = _LANE                                  # single small tile
    else:
        # at least 2 tiles (so both v7x TensorCores get work), capped at default
        tb = min(_DEFAULT_TB, _round_up(pl.cdiv(batch, 2), _LANE))
    padded_b = _round_up(batch, tb)
    num_tiles = padded_b // tb

    if padded_b != batch:
        x = jnp.pad(x, ((0, padded_b - batch), (0, 0)))
    xc = x.astype(compute_dtype)
    w1c = w1.astype(compute_dtype)
    w2c = w2.astype(compute_dtype)

    # --- transposed, sublane-padded last layer ------------------------------
    a_pad = _round_up(n_actions, _SUBLANE)
    w3t = jnp.pad(w3.T, ((0, a_pad - n_actions), (0, 0))).astype(compute_dtype)
    b3t = jnp.pad(jnp.reshape(b3, (n_actions, 1)), ((0, a_pad - n_actions), (0, 0)))

    resident = lambda shape: pl.BlockSpec(shape, lambda i: (0, 0))

    out_t = pl.pallas_call(
        _dqn_kernel,
        out_shape=jax.ShapeDtypeStruct((a_pad, padded_b), jnp.float32),
        grid=(num_tiles,),
        in_specs=[
            pl.BlockSpec((tb, n_states), lambda i: (i, 0)),  # x: streamed per tile
            resident((n_states, hidden)), resident((1, hidden)),   # w1, b1
            resident((hidden, hidden)), resident((1, hidden)),     # w2, b2
            resident((a_pad, hidden)), resident((a_pad, 1)),       # w3^T, b3^T
        ],
        out_specs=pl.BlockSpec((a_pad, tb), lambda i: (0, i)),
        compiler_params=pltpu.CompilerParams(
            dimension_semantics=("parallel",),
        ),
    )(xc, w1c, b1, w2c, b2, w3t, b3t)

    # Small (a_pad, padded_b) slab -> drop padding and transpose back.
    return out_t[:n_actions, :batch].T


def init_dqn_params(key, n_states, n_actions, hidden=64):
    """Deterministic init mimicking PyTorch nn.Linear (uniform +/- 1/sqrt(fan_in)).

    Weights are stored as (in_features, out_features)."""
    keys = jax.random.split(key, 6)

    def linear(kw, kb, fan_in, fan_out):
        bound = 1.0 / jnp.sqrt(fan_in)
        w = jax.random.uniform(kw, (fan_in, fan_out), jnp.float32, -bound, bound)
        b = jax.random.uniform(kb, (1, fan_out), jnp.float32, -bound, bound)
        return w, b

    w1, b1 = linear(keys[0], keys[1], n_states, hidden)
    w2, b2 = linear(keys[2], keys[3], hidden, hidden)
    w3, b3 = linear(keys[4], keys[5], hidden, n_actions)
    return (w1, b1, w2, b2, w3, b3)


def dqn_reference(x, params):
    w1, b1, w2, b2, w3, b3 = params
    h1 = jnp.tanh(x @ w1 + b1)
    h2 = jnp.tanh(h1 @ w2 + b2)
    return h2 @ w3 + b3


if __name__ == "__main__":
    key = jax.random.PRNGKey(0)
    k_x, k_p, k_big = jax.random.split(key, 3)

    batch, n_states, n_actions = 8, 4, 2
    x = jax.random.normal(k_x, (batch, n_states), jnp.float32)
    params = init_dqn_params(k_p, n_states, n_actions)
    ref = dqn_reference(x, params)

    # f32 compute path: exact vs the f32 reference on every TPU generation.
    out_f32 = jax.block_until_ready(dqn_forward(x, params, compute_dtype=jnp.float32))
    assert out_f32.shape == (batch, n_actions)
    assert jnp.allclose(out_f32, ref, atol=1e-5, rtol=1e-5)

    # Default path: bf16 compute on v6e/v7x (looser tolerance), f32 elsewhere.
    cdt = _default_compute_dtype()
    tol = 1e-5 if cdt == jnp.float32 else 5e-2
    out = jax.block_until_ready(dqn_forward(x, params))
    assert out.shape == (batch, n_actions)
    assert jnp.allclose(out, ref, atol=tol, rtol=tol)

    # Multi-tile path: non-multiple batch -> padded, >= 2 grid steps.
    big_batch = 1030
    xb = jax.random.normal(k_big, (big_batch, n_states), jnp.float32)
    out_b = jax.block_until_ready(dqn_forward(xb, params))
    ref_b = dqn_reference(xb, params)
    assert out_b.shape == (big_batch, n_actions)
    assert jnp.allclose(out_b, ref_b, atol=tol, rtol=tol)

    print("KERNEL_OK")
</pallas_src>

<mosaic_0001>
module attributes {stable_mosaic.version = 11 : i64} {
  func.func @_dqn_kernel(%arg0: i32, %arg1: memref<128x4xf32, #tpu.memory_space<vmem>>, %arg2: memref<4x64xf32, #tpu.memory_space<vmem>>, %arg3: memref<1x64xf32, #tpu.memory_space<vmem>>, %arg4: memref<64x64xf32, #tpu.memory_space<vmem>>, %arg5: memref<1x64xf32, #tpu.memory_space<vmem>>, %arg6: memref<8x64xf32, #tpu.memory_space<vmem>>, %arg7: memref<8x1xf32, #tpu.memory_space<vmem>>, %arg8: memref<8x128xf32, #tpu.memory_space<vmem>>) attributes {dimension_semantics = [#tpu.dimension_semantics<parallel>], iteration_bounds = array<i64: 1>, scalar_prefetch = 0 : i64, scratch_operands = 0 : i64, tpu.core_type = #tpu.core_type<tc>, window_params = [{transform_indices = @transform_0, window_bounds = array<i64: 128, 4>}, {pipeline_mode = #tpu.pipeline_mode<synchronous>, transform_indices = @transform_1, window_bounds = array<i64: 4, 64>}, {pipeline_mode = #tpu.pipeline_mode<synchronous>, transform_indices = @transform_2, window_bounds = array<i64: 1, 64>}, {pipeline_mode = #tpu.pipeline_mode<synchronous>, transform_indices = @transform_3, window_bounds = array<i64: 64, 64>}, {pipeline_mode = #tpu.pipeline_mode<synchronous>, transform_indices = @transform_4, window_bounds = array<i64: 1, 64>}, {pipeline_mode = #tpu.pipeline_mode<synchronous>, transform_indices = @transform_5, window_bounds = array<i64: 8, 64>}, {pipeline_mode = #tpu.pipeline_mode<synchronous>, transform_indices = @transform_6, window_bounds = array<i64: 8, 1>}, {transform_indices = @transform_7, window_bounds = array<i64: 8, 128>}]} {
    %c0 = arith.constant 0 : index
    %c0_0 = arith.constant 0 : index
    %0 = vector.load %arg1[%c0, %c0_0] : memref<128x4xf32, #tpu.memory_space<vmem>>, vector<128x4xf32>
    %c0_1 = arith.constant 0 : index
    %c0_2 = arith.constant 0 : index
    %1 = vector.load %arg2[%c0_1, %c0_2] : memref<4x64xf32, #tpu.memory_space<vmem>>, vector<4x64xf32>
    %cst = arith.constant dense<0.000000e+00> : vector<128x64xf32>
    %2 = tpu.matmul %0, %1, %cst {dimension_numbers = #tpu.dot_dimension_numbers<[1], [0], [0], [1], [0, 0, 1, 1], [], []>} : vector<128x4xf32>, vector<4x64xf32>, vector<128x64xf32> -> vector<128x64xf32>
    %c0_3 = arith.constant 0 : index
    %c0_4 = arith.constant 0 : index
    %3 = vector.load %arg3[%c0_3, %c0_4] : memref<1x64xf32, #tpu.memory_space<vmem>>, vector<1x64xf32>
    %4 = vector.broadcast %3 : vector<1x64xf32> to vector<128x64xf32>
    %5 = arith.addf %2, %4 : vector<128x64xf32>
    %6 = math.tanh %5 : vector<128x64xf32>
    %c0_5 = arith.constant 0 : index
    %c0_6 = arith.constant 0 : index
    %7 = vector.load %arg4[%c0_5, %c0_6] : memref<64x64xf32, #tpu.memory_space<vmem>>, vector<64x64xf32>
    %cst_7 = arith.constant dense<0.000000e+00> : vector<128x64xf32>
    %8 = tpu.matmul %6, %7, %cst_7 {dimension_numbers = #tpu.dot_dimension_numbers<[1], [0], [0], [1], [0, 0, 1, 1], [], []>} : vector<128x64xf32>, vector<64x64xf32>, vector<128x64xf32> -> vector<128x64xf32>
    %c0_8 = arith.constant 0 : index
    %c0_9 = arith.constant 0 : index
    %9 = vector.load %arg5[%c0_8, %c0_9] : memref<1x64xf32, #tpu.memory_space<vmem>>, vector<1x64xf32>
    %10 = vector.broadcast %9 : vector<1x64xf32> to vector<128x64xf32>
    %11 = arith.addf %8, %10 : vector<128x64xf32>
    %12 = math.tanh %11 : vector<128x64xf32>
    %c0_10 = arith.constant 0 : index
    %c0_11 = arith.constant 0 : index
    %13 = vector.load %arg6[%c0_10, %c0_11] : memref<8x64xf32, #tpu.memory_space<vmem>>, vector<8x64xf32>
    %cst_12 = arith.constant dense<0.000000e+00> : vector<8x128xf32>
    %14 = tpu.matmul %13, %12, %cst_12 {dimension_numbers = #tpu.dot_dimension_numbers<[1], [1], [0], [0], [0, 0, 1, 0], [], []>} : vector<8x64xf32>, vector<128x64xf32>, vector<8x128xf32> -> vector<8x128xf32>
    %c0_13 = arith.constant 0 : index
    %c0_14 = arith.constant 0 : index
    %15 = vector.load %arg7[%c0_13, %c0_14] : memref<8x1xf32, #tpu.memory_space<vmem>>, vector<8x1xf32>
    %16 = vector.broadcast %15 : vector<8x1xf32> to vector<8x128xf32>
    %17 = arith.addf %14, %16 : vector<8x128xf32>
    %c0_15 = arith.constant 0 : index
    %c0_16 = arith.constant 0 : index
    %18 = vector.load %arg8[%c0_15, %c0_16] : memref<8x128xf32, #tpu.memory_space<vmem>>, vector<8x128xf32>
    tpu.vector_store %arg8[%c0_15, %c0_16], %17 {strides = array<i32>} : memref<8x128xf32, #tpu.memory_space<vmem>>, vector<8x128xf32>,
    return
  }
  func.func @transform_0(%arg0: i32) -> (i32, i32) {
    %c0_i32 = arith.constant 0 : i32
    %c0_i32_0 = arith.constant 0 : i32
    return %arg0, %c0_i32 : i32, i32
  }
  func.func @transform_1(%arg0: i32) -> (i32, i32) {
    %c0_i32 = arith.constant 0 : i32
    %c0_i32_0 = arith.constant 0 : i32
    %c0_i32_1 = arith.constant 0 : i32
    return %c0_i32, %c0_i32_0 : i32, i32
  }
  func.func @transform_2(%arg0: i32) -> (i32, i32) {
    %c0_i32 = arith.constant 0 : i32
    %c0_i32_0 = arith.constant 0 : i32
    %c0_i32_1 = arith.constant 0 : i32
    return %c0_i32, %c0_i32_0 : i32, i32
  }
  func.func @transform_3(%arg0: i32) -> (i32, i32) {
    %c0_i32 = arith.constant 0 : i32
    %c0_i32_0 = arith.constant 0 : i32
    %c0_i32_1 = arith.constant 0 : i32
    return %c0_i32, %c0_i32_0 : i32, i32
  }
  func.func @transform_4(%arg0: i32) -> (i32, i32) {
    %c0_i32 = arith.constant 0 : i32
    %c0_i32_0 = arith.constant 0 : i32
    %c0_i32_1 = arith.constant 0 : i32
    return %c0_i32, %c0_i32_0 : i32, i32
  }
  func.func @transform_5(%arg0: i32) -> (i32, i32) {
    %c0_i32 = arith.constant 0 : i32
    %c0_i32_0 = arith.constant 0 : i32
    %c0_i32_1 = arith.constant 0 : i32
    return %c0_i32, %c0_i32_0 : i32, i32
  }
  func.func @transform_6(%arg0: i32) -> (i32, i32) {
    %c0_i32 = arith.constant 0 : i32
    %c0_i32_0 = arith.constant 0 : i32
    %c0_i32_1 = arith.constant 0 : i32
    return %c0_i32, %c0_i32_0 : i32, i32
  }
  func.func @transform_7(%arg0: i32) -> (i32, i32) {
    %c0_i32 = arith.constant 0 : i32
    %c0_i32_0 = arith.constant 0 : i32
    return %c0_i32, %arg0 : i32, i32
  }
}

</mosaic_0001>

<bundles_post_ra>
// kernel: dqn_forward.1
= control target key start
LH: loop header
LB: loop body
LE: loop exit
PB: predicated region body
PF: predicated region fallthrough
CT: control target
= control target key end

     0   :  { %vm99_vm0 = vcmask 1043456   ;;  %vm50_vm1 = vcmask 31744   ;;  %vm279_vm2 = vcmask 523264   ;;  %vm951_vm3 = vmmov 0   ;;  %s1183_s1 = inlined_call_operand.vmem [shape: f32[4,64], index: 1, kind: input, shape index: {}]   ;;  %s1184_s0 = inlined_call_operand.vmem [shape: f32[128,4], index: 0, kind: input, shape index: {}]   ;;  %s1185_s3 = inlined_call_operand.vmem [shape: f32[64,64], index: 3, kind: input, shape index: {}]   ;;  %s1186_s2 = inlined_call_operand.vmem [shape: f32[1,64], index: 2, kind: input, shape index: {}]   ;;  %s1187_s6 = inlined_call_operand.vmem [shape: f32[8,1], index: 6, kind: input, shape index: {}]   ;;  %s1188_s4 = inlined_call_operand.vmem [shape: f32[1,64], index: 4, kind: input, shape index: {}]   ;;  %s1189_s5 = inlined_call_operand.vmem [shape: f32[8,64], index: 5, kind: input, shape index: {}]   ;;  %s1190_s7 = inlined_call_operand.vmem [shape: f32[8,128], index: 7, kind: output, shape index: {}]  }
   0x1   :  { %v42_v0 = vld [vmem:[%s1183_s1] sm:$0xf]  ;;  %v27_v2 = vld [vmem:[%s1184_s0 + $0x8] sm:$0xff]  ;;  %v28_v3 = vld [vmem:[%s1184_s0 + $0x10] sm:$0xff] }
   0x2   :  { %v26_v1 = vld [vmem:[%s1184_s0] sm:$0xff]  ;;  %732 = vmatprep.subr.msk.mxu1 %vm99_vm0, %v42_v0  ;;  %v29_v4 = vld [vmem:[%s1184_s0 + $0x18] sm:$0xff]  ;;  %v265_v7 = vld [vmem:[%s1185_s3 + $0x8] sm:$0xff] }
   0x3   :  { %734 = vmatprep.mubr.msk.f32.mxu1 %vm50_vm1, %v26_v1  ;;  %733 = vmatpush3.msk.msra.mxu1 %vm99_vm0, %v42_v0  ;;  %v30_v5 = vld [vmem:[%s1184_s0 + $0x20] sm:$0xff]  ;;  %v266_v8 = vld [vmem:[%s1185_s3 + $0x10] sm:$0xff]  ;;  %v267_v9 = vld [vmem:[%s1185_s3 + $0x18] sm:$0xff] }
   0x4   :  { %735 = vmatmul.mubr.msk.f32.vlgmr.msra.gmra.mrb[0].mxu1 %vm50_vm1, %v27_v2  ;;  %v264_v6 = vld [vmem:[%s1185_s3] sm:$0xff]  ;;  %v837_v11 = vpack.c.bf16 %v267_v9, %v266_v8  ;;  %v31_v12 = vld [vmem:[%s1184_s0 + $0x28] sm:$0xff]  ;;  %v32_v15 = vld [vmem:[%s1184_s0 + $0x30] sm:$0xff] }
   0x5   :  { %737 = vmatprep.mubr.msk.f32.mxu1 %vm50_vm1, %v28_v3  ;;  %v833_v10 = vpack.c.bf16 %v265_v7, %v264_v6  ;;  %v268_v13 = vld [vmem:[%s1185_s3 + $0x20] sm:$0xff]  ;;  %v269_v14 = vld [vmem:[%s1185_s3 + $0x28] sm:$0xff]  ;;  %v33_v17 = vld [vmem:[%s1184_s0 + $0x38] sm:$0xff] }
   0x6   :  { %v841_v16 = vpack.c.bf16 %v269_v14, %v268_v13  ;;  %v34_v18 = vld [vmem:[%s1184_s0 + $0x40] sm:$0xff]  ;;  %v35_v19 = vld [vmem:[%s1184_s0 + $0x48] sm:$0xff]  ;;  %v36_v20 = vld [vmem:[%s1184_s0 + $0x50] sm:$0xff]  ;;  %v950_v14 = vmov 0.0|0.0  }
   0x7   :  { %834 = vmatprep.subr.bf16.mxu1 %v833_v10  ;;  %v37_v21 = vld [vmem:[%s1184_s0 + $0x58] sm:$0xff]  ;;  %v38_v22 = vld [vmem:[%s1184_s0 + $0x60] sm:$0xff]  ;;  %v39_v23 = vld [vmem:[%s1184_s0 + $0x68] sm:$0xff]  ;;  %849 = vmatprep.subr.bf16.mxu0 %v950_v14 }
   0x8   :  { %738 = vmatmul.mubr.msk.f32.gmra.mrb[2].mxu1 %vm50_vm1, %v29_v4  ;;  %v40_v24 = vld [vmem:[%s1184_s0 + $0x70] sm:$0xff]  ;;  %v41_v25 = vld [vmem:[%s1184_s0 + $0x78] sm:$0xff]  ;;  %v1088_v29 = vld [vmem:[%s1186_s2] ss:$0 sm:$0xff] }
   0x9   :  { %740 = vmatprep.mubr.msk.f32.mxu1 %vm50_vm1, %v30_v5  ;;  %836 = vmatpush3.bf16.msra.mxu1 %v833_v10  ;;  %v270_v26 = vld [vmem:[%s1185_s3 + $0x30] sm:$0xff]  ;;  %v271_v27 = vld [vmem:[%s1185_s3 + $0x38] sm:$0xff]  ;;  %vm1140_vm4 = vmpackc.low %vm279_vm2, %vm279_vm2 }
   0xa   :  { %838 = vmatprep.subr.bf16.mxu1 %v837_v11  ;;  %v845_v28 = vpack.c.bf16 %v271_v27, %v270_v26 }
   0xc   :  { %741 = vmatmul.mubr.msk.f32.gmra.mrb[4].mxu1 %vm50_vm1, %v31_v12 }
   0xd   :  { %743 = vmatprep.mubr.msk.f32.mxu1 %vm50_vm1, %v32_v15  ;;  %840 = vmatpush3.bf16.msra.mxu1 %v837_v11  ;;  %v952_v15 = vmov 0.0  }
   0xe   :  { %842 = vmatprep.subr.bf16.mxu1 %v841_v16  ;;  %830 = vmatprep.mubr.msk.f32.mxu0 %vm951_vm3, %v952_v15 }
  0x10   :  { %744 = vmatmul.mubr.msk.f32.gmra.mrb[6].mxu1 %vm50_vm1, %v33_v17  ;;  %v490_v17 = vld [vmem:[%s1187_s6] sm:$0xff] }
  0x11   :  { %746 = vmatprep.mubr.msk.f32.mxu1 %vm50_vm1, %v34_v18  ;;  %844 = vmatpush3.bf16.msra.mxu1 %v841_v16  ;;  %v953_v16 = vmov 0   ;;  %v1129_v18 = vld [vmem:[%s1188_s4] ss:$0 sm:$0xff] }
  0x12   :  { %846 = vmatprep.subr.bf16.mxu1 %v845_v28  ;;  %885 = vset.pattern.permute.xlu0 %v953_v16 }
  0x13   :  { %493 = vperm.xlu0 %885, %v490_v17  }
  0x14   :  { %747 = vmatmul.mubr.msk.f32.gmra.mrb[8].mxu1 %vm50_vm1, %v35_v19 }
  0x15   :  { %749 = vmatprep.mubr.msk.f32.mxu1 %vm50_vm1, %v36_v20  ;;  %848 = vmatpush3.bf16.msra.mxu1 %v845_v28 }
  0x18   :  { %750 = vmatmul.mubr.msk.f32.gmra.mrb[10].mxu1 %vm50_vm1, %v37_v21 }
  0x19   :  { %752 = vmatprep.mubr.msk.f32.mxu1 %vm50_vm1, %v38_v22 }
  0x1c   :  { %753 = vmatmul.mubr.msk.f32.gmra.mrb[12].mxu1 %vm50_vm1, %v39_v23 }
  0x1d   :  { %755 = vmatprep.mubr.msk.f32.mxu1 %vm50_vm1, %v40_v24 }
  0x20   :  { %756 = vmatmul.mubr.msk.f32.gmra.mrb[14].mxu1 %vm50_vm1, %v41_v25 }
  0xd7   :  { %v736_v30 = vpop.f32.mrb[0].mxu1 }
  0xd8   :  { %v175_v31 = vadd.f32 %v736_v30, %v1088_v29  ;;  %v169_v32 = vpop.f32.mrb[1].mxu1 }
  0xd9   :  { %v170_v33 = vadd.f32 %v1088_v29, %v169_v32 }
  0xdb   :  { %886 = vtanh.f32 %v170_v33  ;;  %v739_v34 = vpop.f32.mrb[2].mxu1 }
  0xdc   :  { %888 = vtanh.f32 %v175_v31  ;;  %v185_v35 = vadd.f32 %v739_v34, %v1088_v29  ;;  %v179_v36 = vpop.f32.mrb[3].mxu1 }
  0xdd   :  { %v180_v37 = vadd.f32 %v1088_v29, %v179_v36 }
  0xde   :  { %890 = vtanh.f32 %v185_v35 }
  0xdf   :  { %892 = vtanh.f32 %v180_v37  ;;  %v742_v38 = vpop.f32.mrb[4].mxu1 }
  0xe0   :  { %v195_v39 = vadd.f32 %v742_v38, %v1088_v29  ;;  %v189_v40 = vpop.f32.mrb[5].mxu1 }
  0xe1   :  { %v190_v41 = vadd.f32 %v1088_v29, %v189_v40 }
  0xe2   :  { %894 = vtanh.f32 %v195_v39 }
  0xe3   :  { %896 = vtanh.f32 %v190_v41  ;;  %v745_v42 = vpop.f32.mrb[6].mxu1 }
  0xe4   :  { %v205_v43 = vadd.f32 %v745_v42, %v1088_v29  ;;  %v199_v44 = vpop.f32.mrb[7].mxu1 }
  0xe5   :  { %v887_v45 = vpop.eup %886  ;;  %v200_v46 = vadd.f32 %v1088_v29, %v199_v44 }
  0xe6   :  { %v889_v47 = vpop.eup %888  ;;  %774 = vmatprep.mubr.msk.f32.mxu1 %vm279_vm2, %v887_v45  ;;  %898 = vtanh.f32 %v205_v43 }
  0xe7   :  { %775 = vmatmul.mubr.msk.f32.vlgmr.msra.gmra.mrb[16].mxu1 %vm279_vm2, %v889_v47  ;;  %900 = vtanh.f32 %v200_v46  ;;  %v748_v48 = vpop.f32.mrb[8].mxu1 }
  0xe8   :  { %v891_v49 = vpop.eup %890  ;;  %v215_v50 = vadd.f32 %v748_v48, %v1088_v29  ;;  %v209_v51 = vpop.f32.mrb[9].mxu1 }
  0xe9   :  { %v893_v52 = vpop.eup %892  ;;  %v210_v53 = vadd.f32 %v1088_v29, %v209_v51 }
  0xea   :  { %777 = vmatprep.mubr.msk.f32.mxu1 %vm279_vm2, %v893_v52  ;;  %902 = vtanh.f32 %v215_v50 }
  0xeb   :  { %778 = vmatmul.mubr.msk.f32.gmra.mrb[18].mxu1 %vm279_vm2, %v891_v49  ;;  %904 = vtanh.f32 %v210_v53  ;;  %v751_v54 = vpop.f32.mrb[10].mxu1 }
  0xec   :  { %v895_v55 = vpop.eup %894  ;;  %v225_v56 = vadd.f32 %v751_v54, %v1088_v29  ;;  %v219_v57 = vpop.f32.mrb[11].mxu1 }
  0xed   :  { %v897_v58 = vpop.eup %896  ;;  %v220_v59 = vadd.f32 %v1088_v29, %v219_v57 }
  0xee   :  { %780 = vmatprep.mubr.msk.f32.mxu1 %vm279_vm2, %v897_v58  ;;  %906 = vtanh.f32 %v225_v56 }
  0xef   :  { %781 = vmatmul.mubr.msk.f32.gmra.mrb[20].mxu1 %vm279_vm2, %v895_v55  ;;  %908 = vtanh.f32 %v220_v59  ;;  %v754_v60 = vpop.f32.mrb[12].mxu1 }
  0xf0   :  { %v899_v61 = vpop.eup %898  ;;  %v235_v62 = vadd.f32 %v754_v60, %v1088_v29  ;;  %v229_v63 = vpop.f32.mrb[13].mxu1 }
  0xf1   :  { %v901_v0 = vpop.eup %900  ;;  %v230_v1 = vadd.f32 %v1088_v29, %v229_v63 }
  0xf2   :  { %783 = vmatprep.mubr.msk.f32.mxu1 %vm279_vm2, %v901_v0  ;;  %910 = vtanh.f32 %v235_v62 }
  0xf3   :  { %784 = vmatmul.mubr.msk.f32.gmra.mrb[22].mxu1 %vm279_vm2, %v899_v61  ;;  %912 = vtanh.f32 %v230_v1  ;;  %v757_v2 = vpop.f32.mrb[14].mxu1 }
  0xf4   :  { %v903_v3 = vpop.eup %902  ;;  %v245_v4 = vadd.f32 %v757_v2, %v1088_v29  ;;  %v239_v5 = vpop.f32.mrb[15].mxu1 }
  0xf5   :  { %v905_v6 = vpop.eup %904  ;;  %v240_v7 = vadd.f32 %v1088_v29, %v239_v5 }
  0xf6   :  { %786 = vmatprep.mubr.msk.f32.mxu1 %vm279_vm2, %v905_v6  ;;  %914 = vtanh.f32 %v245_v4 }
  0xf7   :  { %787 = vmatmul.mubr.msk.f32.gmra.mrb[24].mxu1 %vm279_vm2, %v903_v3  ;;  %916 = vtanh.f32 %v240_v7 }
  0xf8   :  { %v907_v8 = vpop.eup %906 }
  0xf9   :  { %v909_v9 = vpop.eup %908 }
  0xfa   :  { %789 = vmatprep.mubr.msk.f32.mxu1 %vm279_vm2, %v909_v9 }
  0xfb   :  { %790 = vmatmul.mubr.msk.f32.gmra.mrb[26].mxu1 %vm279_vm2, %v907_v8 }
  0xfc   :  { %v911_v10 = vpop.eup %910 }
  0xfd   :  { %v913_v11 = vpop.eup %912 }
  0xfe   :  { %792 = vmatprep.mubr.msk.f32.mxu1 %vm279_vm2, %v913_v11 }
  0xff   :  { %793 = vmatmul.mubr.msk.f32.gmra.mrb[28].mxu1 %vm279_vm2, %v911_v10 }
 0x100   :  { %v915_v12 = vpop.eup %914 }
 0x101   :  { %v917_v13 = vpop.eup %916 }
 0x102   :  { %795 = vmatprep.mubr.msk.f32.mxu1 %vm279_vm2, %v917_v13  ;;  %v494_v13 = vpop.permute.xlu0 %493 }
 0x103   :  { %796 = vmatmul.mubr.msk.f32.gmra.mrb[30].mxu1 %vm279_vm2, %v915_v12  ;;  %v489_v12 = vld [vmem:[%s1189_s5] sm:$0xff] }
 0x1ba   :  { %v776_v19 = vpop.f32.mrb[16].mxu1 }
 0x1bb   :  { %v400_v20 = vadd.f32 %v776_v19, %v1129_v18  ;;  %v394_v21 = vpop.f32.mrb[17].mxu1 }
 0x1bc   :  { %v395_v22 = vadd.f32 %v1129_v18, %v394_v21 }
 0x1bd   :  { %918 = vtanh.f32 %v400_v20 }
 0x1be   :  { %920 = vtanh.f32 %v395_v22  ;;  %v779_v23 = vpop.f32.mrb[18].mxu1 }
 0x1bf   :  { %v410_v24 = vadd.f32 %v779_v23, %v1129_v18  ;;  %v404_v25 = vpop.f32.mrb[19].mxu1 }
 0x1c0   :  { %v405_v26 = vadd.f32 %v1129_v18, %v404_v25 }
 0x1c1   :  { %922 = vtanh.f32 %v410_v24 }
 0x1c2   :  { %924 = vtanh.f32 %v405_v26  ;;  %v782_v27 = vpop.f32.mrb[20].mxu1 }
 0x1c3   :  { %v420_v28 = vadd.f32 %v782_v27, %v1129_v18  ;;  %v414_v29 = vpop.f32.mrb[21].mxu1 }
 0x1c4   :  { %v415_v30 = vadd.f32 %v1129_v18, %v414_v29 }
 0x1c5   :  { %926 = vtanh.f32 %v420_v28 }
 0x1c6   :  { %928 = vtanh.f32 %v415_v30  ;;  %v785_v31 = vpop.f32.mrb[22].mxu1 }
 0x1c7   :  { %v919_v32 = vpop.eup %918  ;;  %v430_v33 = vadd.f32 %v785_v31, %v1129_v18  ;;  %v424_v34 = vpop.f32.mrb[23].mxu1 }
 0x1c8   :  { %v921_v35 = vpop.eup %920  ;;  %v425_v37 = vadd.f32 %v1129_v18, %v424_v34 }
 0x1c9   :  { %v850_v38 = vpack.c.bf16 %v919_v32, %v921_v35  ;;  %930 = vtanh.f32 %v430_v33 }
 0x1ca   :  { %932 = vtanh.f32 %v425_v37  ;;  %v788_v39 = vpop.f32.mrb[24].mxu1 }
 0x1cb   :  { %v923_v40 = vpop.eup %922  ;;  %852 = vmatpush3.bf16.xpose.msk.msra.mxu0 %vm1140_vm4, %v850_v38  ;;  %v440_v41 = vadd.f32 %v788_v39, %v1129_v18  ;;  %v434_v42 = vpop.f32.mrb[25].mxu1 }
 0x1cc   :  { %v925_v43 = vpop.eup %924  ;;  %853 = vmatprep.subr.bf16.mxu0 %v950_v14  ;;  %v435_v44 = vadd.f32 %v1129_v18, %v434_v42 }
 0x1cd   :  { %v854_v45 = vpack.c.bf16 %v923_v40, %v925_v43  ;;  %934 = vtanh.f32 %v440_v41 }
 0x1ce   :  { %936 = vtanh.f32 %v435_v44  ;;  %v791_v46 = vpop.f32.mrb[26].mxu1 }
 0x1cf   :  { %v927_v47 = vpop.eup %926  ;;  %v450_v48 = vadd.f32 %v791_v46, %v1129_v18  ;;  %v444_v49 = vpop.f32.mrb[27].mxu1 }
 0x1d0   :  { %v929_v50 = vpop.eup %928  ;;  %v445_v51 = vadd.f32 %v1129_v18, %v444_v49 }
 0x1d1   :  { %v858_v52 = vpack.c.bf16 %v927_v47, %v929_v50  ;;  %938 = vtanh.f32 %v450_v48 }
 0x1d2   :  { %940 = vtanh.f32 %v445_v51  ;;  %v794_v53 = vpop.f32.mrb[28].mxu1 }
 0x1d3   :  { %v931_v54 = vpop.eup %930  ;;  %856 = vmatpush3.bf16.xpose.msk.msra.mxu0 %vm1140_vm4, %v854_v45  ;;  %v460_v55 = vadd.f32 %v794_v53, %v1129_v18  ;;  %v454_v56 = vpop.f32.mrb[29].mxu1 }
 0x1d4   :  { %v933_v57 = vpop.eup %932  ;;  %857 = vmatprep.subr.bf16.mxu0 %v950_v14  ;;  %v455_v58 = vadd.f32 %v1129_v18, %v454_v56 }
 0x1d5   :  { %v862_v59 = vpack.c.bf16 %v931_v54, %v933_v57  ;;  %942 = vtanh.f32 %v460_v55 }
 0x1d6   :  { %944 = vtanh.f32 %v455_v58  ;;  %v797_v60 = vpop.f32.mrb[30].mxu1 }
 0x1d7   :  { %v935_v61 = vpop.eup %934  ;;  %v470_v62 = vadd.f32 %v797_v60, %v1129_v18  ;;  %v464_v63 = vpop.f32.mrb[31].mxu1 }
 0x1d8   :  { %v937_v0 = vpop.eup %936  ;;  %v465_v1 = vadd.f32 %v1129_v18, %v464_v63 }
 0x1d9   :  { %v866_v2 = vpack.c.bf16 %v935_v61, %v937_v0  ;;  %946 = vtanh.f32 %v470_v62 }
 0x1da   :  { %948 = vtanh.f32 %v465_v1 }
 0x1db   :  { %v939_v3 = vpop.eup %938  ;;  %860 = vmatpush3.bf16.xpose.msk.msra.mxu0 %vm1140_vm4, %v858_v52 }
 0x1dc   :  { %v941_v4 = vpop.eup %940  ;;  %861 = vmatprep.subr.bf16.mxu0 %v950_v14 }
 0x1dd   :  { %v870_v5 = vpack.c.bf16 %v939_v3, %v941_v4 }
 0x1df   :  { %v943_v6 = vpop.eup %942 }
 0x1e0   :  { %v945_v7 = vpop.eup %944 }
 0x1e1   :  { %v874_v8 = vpack.c.bf16 %v943_v6, %v945_v7 }
 0x1e3   :  { %v947_v9 = vpop.eup %946  ;;  %864 = vmatpush3.bf16.xpose.msk.msra.mxu0 %vm1140_vm4, %v862_v59 }
 0x1e4   :  { %v949_v10 = vpop.eup %948  ;;  %865 = vmatprep.subr.bf16.mxu0 %v950_v14 }
 0x1e5   :  { %v878_v11 = vpack.c.bf16 %v947_v9, %v949_v10 }
 0x1eb   :  { %868 = vmatpush3.bf16.xpose.msk.msra.mxu0 %vm1140_vm4, %v866_v2 }
 0x1ec   :  { %869 = vmatprep.subr.bf16.mxu0 %v950_v14 }
 0x1f3   :  { %872 = vmatpush3.bf16.xpose.msk.msra.mxu0 %vm1140_vm4, %v870_v5 }
 0x1f4   :  { %873 = vmatprep.subr.bf16.mxu0 %v950_v14 }
 0x1fb   :  { %876 = vmatpush3.bf16.xpose.msk.msra.mxu0 %vm1140_vm4, %v874_v8 }
 0x1fc   :  { %877 = vmatprep.subr.bf16.mxu0 %v950_v14 }
 0x203   :  { %880 = vmatpush3.bf16.xpose.msk.msra.mxu0 %vm1140_vm4, %v878_v11 }
 0x20a   :  { %831 = vmatmul.mubr.msk.f32.vlgmr.msra.gmra.mrb[0].mxu0 %vm279_vm2, %v489_v12 }
 0x2dd   :  { %v613_v15 = vpop.f32.mrb[0].mxu0 }
 0x2de   :  { %v614_v16 = vadd.f32 %v613_v15, %v494_v13  ;;  %v832_v17 = vpop.f32.mrb[1].mxu0 }
 0x2e0   :  { %617 = vst [vmem:[%s1190_s7] sm:$0xff] %v614_v16 }

</bundles_post_ra>
